<compile_context>
chip_gen: v6e
topology: v6e:2x2x1
jax: 0.10.0
libtpu: 0.0.40
codegen_flags: <defaults>
</compile_context>

<pallas_src>
import jax
import jax.numpy as jnp
from jax.experimental import pallas as pl
from jax.experimental.pallas import tpu as pltpu


def _cdiv(a: int, b: int) -> int:
    return (a + b - 1) // b


def _round_up(a: int, b: int) -> int:
    return _cdiv(a, b) * b


def _choose_batch_tile(B: int, max_tb: int = 4096) -> tuple[int, int]:
    """Pick the batch tile (sublane axis) and grid length.

    Tile is 8-aligned (or equal to the full batch), sized so per-step DMA bytes
    dwarf the per-step pipeline overhead, with >=2 grid steps when there is
    enough work (keeps both v7x TensorCores busy via dimension_semantics).
    """
    if B <= 8:
        return B, 1                       # block == full array dim (allowed)
    n = _cdiv(B, max_tb)
    if B >= 2048:
        n = max(n, 2)                     # >=2 steps -> both v7x TCs get work
    tb = _round_up(_cdiv(B, n), 8)        # sublane-aligned tile, near-divisor of B
    if tb >= B:
        return B, 1
    return tb, _cdiv(B, tb)


def mlp_kernel(x_ref, w1t_ref, b1_ref, w2_ref, b2_ref, o_ref):
    # fc1 on the MXU: (TB, F)bf16 @ (F, H)bf16 -> (TB, H) f32 accumulate.
    x = x_ref[...].astype(jnp.bfloat16)
    h = jnp.dot(x, w1t_ref[...], preferred_element_type=jnp.float32)
    h = jnp.maximum(h + b1_ref[...], 0.0)                 # bias + ReLU in f32 (VPU)
    # fc2 also on the MXU (it has huge slack): (TB, H)bf16 @ (H, 1)bf16 -> (TB, 1).
    y = jnp.dot(h.astype(jnp.bfloat16), w2_ref[...],
                preferred_element_type=jnp.float32)
    o_ref[...] = jax.nn.sigmoid(y + b2_ref[...]).astype(o_ref.dtype)


def mlp_forward(x, w1, b1, w2, b2, *, block_b: int = 4096):
    """x: (B, F) f32.  PyTorch layouts: w1 (H, F), b1 (H,), w2 (1, H), b2 (1,)."""
    B, F = x.shape
    H = w1.shape[0]
    TB, n_tiles = _choose_batch_tile(B, block_b)

    # Tiny one-time weight reshapes/casts (no activation traffic).
    w1t = jnp.asarray(w1, jnp.float32).T.astype(jnp.bfloat16)                # (F, H)
    b1r = jnp.asarray(b1, jnp.float32).reshape(1, H)                         # (1, H)
    w2c = jnp.asarray(w2, jnp.float32).reshape(1, H).T.astype(jnp.bfloat16)  # (H, 1)
    b2r = jnp.asarray(b2, jnp.float32).reshape(1, 1)                         # (1, 1)

    return pl.pallas_call(
        mlp_kernel,
        out_shape=jax.ShapeDtypeStruct((B, 1), jnp.float32),
        grid=(n_tiles,),
        in_specs=[
            pl.BlockSpec((TB, F), lambda i: (i, 0)),   # x tile, direct from HBM
            pl.BlockSpec((F, H), lambda i: (0, 0)),    # w1^T resident in VMEM
            pl.BlockSpec((1, H), lambda i: (0, 0)),    # b1 resident
            pl.BlockSpec((H, 1), lambda i: (0, 0)),    # w2 (column) resident
            pl.BlockSpec((1, 1), lambda i: (0, 0)),    # b2 resident
        ],
        out_specs=pl.BlockSpec((TB, 1), lambda i: (i, 0)),
        compiler_params=pltpu.CompilerParams(
            dimension_semantics=("parallel",),
            vmem_limit_bytes=32 * 1024 * 1024),
    )(jnp.asarray(x, jnp.float32), w1t, b1r, w2c, b2r)


if __name__ == "__main__":
    input_size = 103
    hidden_size = 64
    batch = 8

    key = jax.random.PRNGKey(0)
    k_x, k_w1, k_b1, k_w2, k_b2 = jax.random.split(key, 5)

    # Parameters in PyTorch nn.Linear layout: fc1.weight (64,103), fc1.bias (64,),
    # fc2.weight (1,64), fc2.bias (1,).
    x = jax.random.normal(k_x, (batch, input_size), dtype=jnp.float32)
    w1 = jax.random.normal(k_w1, (hidden_size, input_size), dtype=jnp.float32) * 0.1
    b1 = jax.random.normal(k_b1, (hidden_size,), dtype=jnp.float32) * 0.1
    w2 = jax.random.normal(k_w2, (1, hidden_size), dtype=jnp.float32) * 0.1
    b2 = jax.random.normal(k_b2, (1,), dtype=jnp.float32) * 0.1

    out = jax.block_until_ready(mlp_forward(x, w1, b1, w2, b2))

    # Pure-JAX f32 reference (kernel uses bf16 matmul inputs -> loose tolerance).
    ref = jax.nn.sigmoid(jnp.maximum(x @ w1.T + b1, 0.0) @ w2.T + b2)
    assert out.shape == (batch, 1)
    assert jnp.allclose(out, ref, atol=1e-2, rtol=1e-2), (
        f"max abs err {jnp.max(jnp.abs(out - ref))}")

    # Extra check: multi-step grid + ragged batch edge (exercises the tiling path).
    batch2 = 2500
    x2 = jax.random.normal(jax.random.PRNGKey(1), (batch2, input_size), jnp.float32)
    out2 = jax.block_until_ready(mlp_forward(x2, w1, b1, w2, b2, block_b=1024))
    ref2 = jax.nn.sigmoid(jnp.maximum(x2 @ w1.T + b1, 0.0) @ w2.T + b2)
    assert out2.shape == (batch2, 1)
    assert jnp.allclose(out2, ref2, atol=1e-2, rtol=1e-2), (
        f"max abs err {jnp.max(jnp.abs(out2 - ref2))}")

    print("KERNEL_OK")
</pallas_src>

<mosaic_0001>
module attributes {stable_mosaic.version = 11 : i64} {
  func.func @mlp_kernel(%arg0: i32, %arg1: memref<8x103xf32, #tpu.memory_space<vmem>>, %arg2: memref<103x64xbf16, #tpu.memory_space<vmem>>, %arg3: memref<1x64xf32, #tpu.memory_space<vmem>>, %arg4: memref<64x1xbf16, #tpu.memory_space<vmem>>, %arg5: memref<1x1xf32, #tpu.memory_space<vmem>>, %arg6: memref<8x1xf32, #tpu.memory_space<vmem>>) attributes {dimension_semantics = [#tpu.dimension_semantics<parallel>], iteration_bounds = array<i64: 1>, scalar_prefetch = 0 : i64, scratch_operands = 0 : i64, tpu.core_type = #tpu.core_type<tc>, window_params = [{transform_indices = @transform_0, window_bounds = array<i64: 8, 103>}, {pipeline_mode = #tpu.pipeline_mode<synchronous>, transform_indices = @transform_1, window_bounds = array<i64: 103, 64>}, {pipeline_mode = #tpu.pipeline_mode<synchronous>, transform_indices = @transform_2, window_bounds = array<i64: 1, 64>}, {pipeline_mode = #tpu.pipeline_mode<synchronous>, transform_indices = @transform_3, window_bounds = array<i64: 64, 1>}, {pipeline_mode = #tpu.pipeline_mode<synchronous>, transform_indices = @transform_4, window_bounds = array<i64: 1, 1>}, {transform_indices = @transform_5, window_bounds = array<i64: 8, 1>}]} {
    %c0 = arith.constant 0 : index
    %c0_0 = arith.constant 0 : index
    %0 = vector.load %arg1[%c0, %c0_0] : memref<8x103xf32, #tpu.memory_space<vmem>>, vector<8x103xf32>
    %1 = arith.truncf %0 : vector<8x103xf32> to vector<8x103xbf16>
    %c0_1 = arith.constant 0 : index
    %c0_2 = arith.constant 0 : index
    %2 = vector.load %arg2[%c0_1, %c0_2] : memref<103x64xbf16, #tpu.memory_space<vmem>>, vector<103x64xbf16>
    %cst = arith.constant dense<0.000000e+00> : vector<8x64xf32>
    %3 = tpu.matmul %1, %2, %cst {dimension_numbers = #tpu.dot_dimension_numbers<[1], [0], [0], [1], [0, 0, 1, 1], [], []>} : vector<8x103xbf16>, vector<103x64xbf16>, vector<8x64xf32> -> vector<8x64xf32>
    %c0_3 = arith.constant 0 : index
    %c0_4 = arith.constant 0 : index
    %4 = vector.load %arg3[%c0_3, %c0_4] : memref<1x64xf32, #tpu.memory_space<vmem>>, vector<1x64xf32>
    %5 = vector.broadcast %4 : vector<1x64xf32> to vector<8x64xf32>
    %6 = arith.addf %3, %5 : vector<8x64xf32>
    %cst_5 = arith.constant 0.000000e+00 : f32
    %7 = vector.broadcast %cst_5 : f32 to vector<8x64xf32>
    %8 = arith.maximumf %6, %7 : vector<8x64xf32>
    %9 = arith.truncf %8 : vector<8x64xf32> to vector<8x64xbf16>
    %c0_6 = arith.constant 0 : index
    %c0_7 = arith.constant 0 : index
    %10 = vector.load %arg4[%c0_6, %c0_7] : memref<64x1xbf16, #tpu.memory_space<vmem>>, vector<64x1xbf16>
    %cst_8 = arith.constant dense<0.000000e+00> : vector<8x1xf32>
    %11 = tpu.matmul %9, %10, %cst_8 {dimension_numbers = #tpu.dot_dimension_numbers<[1], [0], [0], [1], [0, 0, 1, 1], [], []>} : vector<8x64xbf16>, vector<64x1xbf16>, vector<8x1xf32> -> vector<8x1xf32>
    %c0_9 = arith.constant 0 : index
    %c0_10 = arith.constant 0 : index
    %12 = vector.load %arg5[%c0_9, %c0_10] : memref<1x1xf32, #tpu.memory_space<vmem>>, vector<1x1xf32>
    %13 = vector.broadcast %12 : vector<1x1xf32> to vector<8x1xf32>
    %14 = arith.addf %11, %13 : vector<8x1xf32>
    %15 = arith.negf %14 : vector<8x1xf32>
    %16 = math.exp %15 : vector<8x1xf32>
    %cst_11 = arith.constant 1.000000e+00 : f32
    %17 = vector.broadcast %cst_11 : f32 to vector<8x1xf32>
    %18 = arith.addf %17, %16 : vector<8x1xf32>
    %19 = arith.divf %17, %18 : vector<8x1xf32>
    %c0_12 = arith.constant 0 : index
    %c0_13 = arith.constant 0 : index
    %20 = vector.load %arg6[%c0_12, %c0_13] : memref<8x1xf32, #tpu.memory_space<vmem>>, vector<8x1xf32>
    tpu.vector_store %arg6[%c0_12, %c0_13], %19 {strides = array<i32>} : memref<8x1xf32, #tpu.memory_space<vmem>>, vector<8x1xf32>,
    return
  }
  func.func @transform_0(%arg0: i32) -> (i32, i32) {
    %c0_i32 = arith.constant 0 : i32
    %c0_i32_0 = arith.constant 0 : i32
    return %arg0, %c0_i32 : i32, i32
  }
  func.func @transform_1(%arg0: i32) -> (i32, i32) {
    %c0_i32 = arith.constant 0 : i32
    %c0_i32_0 = arith.constant 0 : i32
    %c0_i32_1 = arith.constant 0 : i32
    return %c0_i32, %c0_i32_0 : i32, i32
  }
  func.func @transform_2(%arg0: i32) -> (i32, i32) {
    %c0_i32 = arith.constant 0 : i32
    %c0_i32_0 = arith.constant 0 : i32
    %c0_i32_1 = arith.constant 0 : i32
    return %c0_i32, %c0_i32_0 : i32, i32
  }
  func.func @transform_3(%arg0: i32) -> (i32, i32) {
    %c0_i32 = arith.constant 0 : i32
    %c0_i32_0 = arith.constant 0 : i32
    %c0_i32_1 = arith.constant 0 : i32
    return %c0_i32, %c0_i32_0 : i32, i32
  }
  func.func @transform_4(%arg0: i32) -> (i32, i32) {
    %c0_i32 = arith.constant 0 : i32
    %c0_i32_0 = arith.constant 0 : i32
    %c0_i32_1 = arith.constant 0 : i32
    return %c0_i32, %c0_i32_0 : i32, i32
  }
  func.func @transform_5(%arg0: i32) -> (i32, i32) {
    %c0_i32 = arith.constant 0 : i32
    %c0_i32_0 = arith.constant 0 : i32
    return %arg0, %c0_i32 : i32, i32
  }
}

</mosaic_0001>

<bundles_post_ra>
// kernel: tpu_custom_call.1
= control target key start
LH: loop header
LB: loop body
LE: loop exit
PB: predicated region body
PF: predicated region fallthrough
CT: control target
= control target key end

     0   :  { %vm88_vm0 = vcmask 1042432   ;;  %vm89_vm1 = vcmask 1043456   ;;  %v309_v0 = vmov 0.0   ;;  %v310_v2 = vmov 65535   ;;  %s387_s1 = inlined_call_operand.vmem [shape: bf16[103,64], index: 1, kind: input, shape index: {}]   ;;  %s388_s3 = inlined_call_operand.vmem [shape: bf16[64,1], index: 3, kind: input, shape index: {}]   ;;  %s389_s0 = inlined_call_operand.vmem [shape: f32[8,103], index: 0, kind: input, shape index: {}]   ;;  %s390_s4 = inlined_call_operand.<no memory space> [shape: f32[1,1], index: 4, kind: input, shape index: {}]   ;;  %s391_s2 = inlined_call_operand.vmem [shape: f32[1,64], index: 2, kind: input, shape index: {}]   ;;  %s392_s5 = inlined_call_operand.vmem [shape: f32[8,1], index: 5, kind: output, shape index: {}]  }
   0x1   :  { %261 = vmatprep.subr.bf16.mxu0 %v309_v0  ;;  %v294_v1 = vld [vmem:[%s387_s1 + $0x30] ss:$0 sps:$4 sm:$0xff]   ;;  %v90_v3 = vsel %vm88_vm0, 4294967295, %v310_v2  ;;  %279 = vmatprep.subr.bf16.mxu1 %v309_v0  ;;  %v295_v6 = vld [vmem:[%s387_s1 + $0x28] sm:$0xff]   ;;  %vm311_vm2 = vmmov 0   ;;  %v301_v7 = vld [vmem:[%s388_s3 + $0x18] sm:$0xff]   ;;  %v10_v18 = vstv %s390_s4 }
   0x2   :  { %v91_v4 = vsel %vm89_vm1, %v90_v3, 0  ;;  %275 = vmatprep.mubr.msk.bf16.mxu0 %vm311_vm2, %v309_v0  ;;  %287 = vmatprep.mubr.msk.bf16.mxu1 %vm311_vm2, %v309_v0  ;;  %v296_v8 = vld [vmem:[%s387_s1 + $0x20] sm:$0xff]   ;;  %v302_v9 = vld [vmem:[%s388_s3 + $0x10] sm:$0xff]   ;;  %v297_v10 = vld [vmem:[%s387_s1 + $0x18] sm:$0xff]   ;;  %vm84_vm3 = vcmask 842752   ;;  %vm176_vm4 = vcmask 523264  }
   0x3   :  { %v93_v5 = vand.u32 %v294_v1, %v91_v4  ;;  %280 = vmatpush3.bf16.msra.mxu1 %v301_v7  ;;  %v298_v11 = vld [vmem:[%s387_s1 + $0x10] sm:$0xff]   ;;  %v299_v12 = vld [vmem:[%s387_s1 + $0x8] sm:$0xff]   ;;  %v300_v13 = vld [vmem:[%s387_s1] sm:$0xff]   ;;  %11 = vst [vmem:[#allocation2] sm:$0x1] %v10_v18  ;;  %vm226_vm5 = vcmask 7168  }
   0x4   :  { %281 = vmatprep.subr.bf16.mxu1 %v309_v0  ;;  %v23_v14 = vld [vmem:[%s389_s0] sm:$0xff]  ;;  %v303_v16 = vld [vmem:[%s388_s3 + $0x8] sm:$0xff]  }
   0x5   :  { %262 = vmatpush3.bf16.msra.mxu0 %v93_v5  ;;  %v24_v15 = vpack.c.bf16 %v23_v14, %v23_v14  ;;  %v304_v17 = vld [vmem:[%s388_s3] sm:$0xff]  }
   0x6   :  { %263 = vmatprep.subr.bf16.mxu0 %v309_v0  ;;  %v232_v19 = vld [vmem:[%s391_s2] ss:$0 sm:$0xff] }
   0x7   :  { %282 = vmatpush3.bf16.msra.mxu1 %v302_v9 }
   0x8   :  { %283 = vmatprep.subr.bf16.mxu1 %v309_v0 }
   0x9   :  { %264 = vmatpush3.bf16.msra.mxu0 %v295_v6 }
   0xa   :  { %265 = vmatprep.subr.bf16.mxu0 %v309_v0  ;;  %v241_v27 = vld [vmem:[#allocation2] ss:$0 sm:$0xff] }
   0xb   :  { %284 = vmatpush3.bf16.msra.mxu1 %v303_v16 }
   0xc   :  { %285 = vmatprep.subr.bf16.mxu1 %v309_v0 }
   0xd   :  { %266 = vmatpush3.bf16.msra.mxu0 %v296_v8 }
   0xe   :  { %267 = vmatprep.subr.bf16.mxu0 %v309_v0 }
   0xf   :  { %286 = vmatpush3.bf16.msra.mxu1 %v304_v17 }
  0x11   :  { %268 = vmatpush3.bf16.msra.mxu0 %v297_v10 }
  0x12   :  { %269 = vmatprep.subr.bf16.mxu0 %v309_v0 }
  0x15   :  { %270 = vmatpush3.bf16.msra.mxu0 %v298_v11 }
  0x16   :  { %271 = vmatprep.subr.bf16.mxu0 %v309_v0 }
  0x19   :  { %272 = vmatpush3.bf16.msra.mxu0 %v299_v12 }
  0x1a   :  { %273 = vmatprep.subr.bf16.mxu0 %v309_v0 }
  0x1d   :  { %274 = vmatpush3.bf16.msra.mxu0 %v300_v13 }
  0x20   :  { %276 = vmatmul.mubr.msk.bf16.vlgmr.msra.gmra.mxu0 %vm84_vm3, %v24_v15 }
  0xe0   :  { %v129_v20 = vpop.f32.mrf.mxu0 }
  0xe1   :  { %v130_v21 = vadd.f32 %v232_v19, %v129_v20 }
  0xe2   :  { %v277_v22 = vpop.f32.mrf.mxu0 }
  0xe3   :  { %v135_v23 = vmax.f32 %v130_v21, 0.0 }
  0xe4   :  { %v132_v24 = vpop.f32.mrf.mxu0 }
  0xe5   :  { %v136_v25 = vpack.c.bf16 %v135_v23, %v135_v23 }
  0xe6   :  { %v278_v26 = vpop.f32.mrf.mxu0 }
  0xe7   :  { %288 = vmatmul.mubr.msk.bf16.vlgmr.msra.gmra.mxu1 %vm176_vm4, %v136_v25 }
 0x1a7   :  { %v214_v28 = vpop.f32.mrf.mxu1 }
 0x1a8   :  { %v215_v29 = vadd.f32 %v241_v27, %v214_v28 }
 0x1a9   :  { %v289_v30 = vpop.f32.mrf.mxu1 }
 0x1aa   :  { %v247_v31 = vmul.f32 -1.442695, %v215_v29 }
 0x1ab   :  { %v217_v32 = vpop.f32.mrf.mxu1 }
 0x1ac   :  { %305 = vpow2.f32 %v247_v31 }
 0x1ad   :  { %v290_v33 = vpop.f32.mrf.mxu1 }
 0x1b9   :  { %v306_v34 = vpop.eup %305 }
 0x1ba   :  { %v223_v35 = vadd.f32 1.0, %v306_v34 }
 0x1bc   :  { %307 = vrcp.f32 %v223_v35 }
 0x1c9   :  { %v308_v36 = vpop.eup %307 }
 0x1ca   :  { %227 = vst.msk [vmem:[%s392_s5] sm:$0xff] %vm226_vm5, %v308_v36 }

</bundles_post_ra>
